<compile_context>
chip_gen: v7x
topology: tpu7x:2x2x1
jax: 0.10.0
libtpu: 0.0.40
codegen_flags: <defaults>
</compile_context>

<pallas_src>
import math

import jax
import jax.numpy as jnp
from jax.experimental import pallas as pl
from jax.experimental.pallas import tpu as pltpu


def _attention_kernel(enc_ref, dec_att_ref, w_enc_t_ref, w_full_ref,
                      context_ref, alpha_ref):
    TB, P, E = enc_ref.shape
    A = w_enc_t_ref.shape[1]

    enc = enc_ref[...]                                       # (TB, P, E)

    # Single MXU matmul with M = TB*P (instead of TB matmuls with M = P).
    enc2d = enc.reshape(TB * P, E)
    enc_att = jnp.dot(enc2d, w_enc_t_ref[...],
                      preferred_element_type=jnp.float32)    # (TB*P, A)
    enc_att = enc_att.reshape(TB, P, A)

    # Decoder projection + b_enc + b_dec precomputed in the wrapper: (TB, A).
    h = jnp.maximum(enc_att + dec_att_ref[...][:, None, :], 0.0)        # (TB, P, A)

    # full_att Linear(A -> 1): weighted lane reduce over A.
    # (b_full omitted: a constant added before softmax changes nothing.)
    att = jnp.sum(h * w_full_ref[...][None, :, :], axis=-1)             # (TB, P)

    # Softmax over P (last dim -> lane reduce on the XLU).
    m = jnp.max(att, axis=-1, keepdims=True)                            # (TB, 1)
    p = jnp.exp(att - m)
    denom = jnp.sum(p, axis=-1, keepdims=True)
    alpha = p * pl.reciprocal(denom, approx=False)                      # (TB, P)

    # context = sum_P alpha * enc : VPU multiply + sublane reduce (no M=1 matmul).
    context = jnp.sum(enc * alpha[:, :, None], axis=1)                  # (TB, E)

    context_ref[...] = context.astype(context_ref.dtype)
    alpha_ref[...] = alpha.astype(alpha_ref.dtype)


def _pick_block_b(B, P, E, A):
    """Largest divisor of B whose double-buffered f32 input block fits a
    conservative VMEM budget (safe on v5e/v6e/v7x default scoped VMEM)."""
    budget = 8 * 1024 * 1024
    per_row_bytes = 2 * (P * E + A + E + P) * 4   # 2x for double buffering
    cap = max(1, budget // per_row_bytes)
    for tb in range(min(B, cap), 0, -1):
        if B % tb == 0:
            return tb
    return 1


def attention_forward(encoder_features, decoder_hidden, params, *, block_b=None):
    """encoder_features: (B, E, H, W) NCHW, decoder_hidden: (B, D)."""
    B, E, H, W = encoder_features.shape
    P = H * W
    A = params["w_enc"].shape[0]

    # NCHW -> (B, P, E), same as torch reshape + transpose(1, 2).
    # TODO(synk): consume the native (B, E, P) layout in-kernel to avoid this HBM
    # round trip at large E*P (negligible at the test sizes).
    enc = encoder_features.reshape(B, E, P).transpose(0, 2, 1).astype(jnp.float32)

    # Hoist the decoder projection out of the kernel (one whole-batch matmul)
    # and fold both Linear biases into it.
    dec_att = (decoder_hidden @ params["w_dec"].T
               + params["b_dec"] + params["b_enc"]).astype(jnp.float32)  # (B, A)

    w_enc_t = params["w_enc"].T.astype(jnp.float32)     # (E, A), resident via const map
    w_full = params["w_full"].reshape(1, A).astype(jnp.float32)

    TB = block_b if block_b is not None else _pick_block_b(B, P, E, A)
    assert B % TB == 0
    grid = (B // TB,)
    const = lambda b: (0, 0)

    context, alpha = pl.pallas_call(
        _attention_kernel,
        out_shape=(
            jax.ShapeDtypeStruct((B, E), jnp.float32),
            jax.ShapeDtypeStruct((B, P), jnp.float32),
        ),
        grid_spec=pltpu.PrefetchScalarGridSpec(
            num_scalar_prefetch=0,
            grid=grid,
            in_specs=[
                pl.BlockSpec((TB, P, E), lambda b: (b, 0, 0)),   # encoder features
                pl.BlockSpec((TB, A), lambda b: (b, 0)),         # precomputed dec_att
                pl.BlockSpec((E, A), const),                     # W_enc^T (resident)
                pl.BlockSpec((1, A), const),                     # w_full  (resident)
            ],
            out_specs=[
                pl.BlockSpec((TB, E), lambda b: (b, 0)),         # context
                pl.BlockSpec((TB, P), lambda b: (b, 0)),         # alpha
            ],
        ),
        compiler_params=pltpu.CompilerParams(
            dimension_semantics=("parallel",)),                  # megacore over batch
    )(enc, dec_att, w_enc_t, w_full)

    return context, alpha


def init_params(key, encoder_dim, decoder_dim, attention_dim):
    """Deterministic init mirroring the PyTorch module:
       xavier_uniform_ on weights, default Linear bias init (U(-1/sqrt(fan_in), ...))."""
    ks = jax.random.split(key, 6)

    def xavier(k, shape):  # shape = (out, in)
        fan_out, fan_in = shape
        bound = math.sqrt(6.0 / (fan_in + fan_out))
        return jax.random.uniform(k, shape, jnp.float32, -bound, bound)

    def bias(k, fan_in, n):
        bound = 1.0 / math.sqrt(fan_in)
        return jax.random.uniform(k, (n,), jnp.float32, -bound, bound)

    return {
        "w_enc": xavier(ks[0], (attention_dim, encoder_dim)),
        "b_enc": bias(ks[1], encoder_dim, attention_dim),
        "w_dec": xavier(ks[2], (attention_dim, decoder_dim)),
        "b_dec": bias(ks[3], decoder_dim, attention_dim),
        "w_full": xavier(ks[4], (1, attention_dim)),
        "b_full": bias(ks[5], attention_dim, 1),
    }


def attention_ref(encoder_features, decoder_hidden, params):
    """Pure-JAX reference of the PyTorch forward, for correctness check."""
    B, E, H, W = encoder_features.shape
    enc = encoder_features.reshape(B, E, H * W).transpose(0, 2, 1)       # (B, P, E)
    enc_att = enc @ params["w_enc"].T + params["b_enc"]                  # (B, P, A)
    dec_att = decoder_hidden @ params["w_dec"].T + params["b_dec"]       # (B, A)
    h = jax.nn.relu(enc_att + dec_att[:, None, :])
    att = (h @ params["w_full"].T + params["b_full"])[..., 0]            # (B, P)
    alpha = jax.nn.softmax(att, axis=1)
    context = jnp.sum(enc * alpha[..., None], axis=1)                    # (B, E)
    return context, alpha


if __name__ == "__main__":
    B, E, H, W = 2, 32, 4, 4          # encoder_dim=32, 4x4 spatial -> P=16
    D, A = 64, 32                     # decoder_dim=64, attention_dim=32

    key = jax.random.PRNGKey(0)
    k_enc, k_dec, k_par = jax.random.split(key, 3)

    encoder_features = jax.random.normal(k_enc, (B, E, H, W), jnp.float32)
    decoder_hidden = jax.random.normal(k_dec, (B, D), jnp.float32)
    params = init_params(k_par, E, D, A)

    context, alpha = attention_forward(encoder_features, decoder_hidden, params)
    jax.block_until_ready((context, alpha))

    ctx_ref, alpha_r = attention_ref(encoder_features, decoder_hidden, params)
    assert context.shape == (B, E) and alpha.shape == (B, H * W)
    assert jnp.allclose(context, ctx_ref, atol=1e-5, rtol=1e-5)
    assert jnp.allclose(alpha, alpha_r, atol=1e-5, rtol=1e-5)

    print("KERNEL_OK")
</pallas_src>

<mosaic_0001>
module attributes {stable_mosaic.version = 11 : i64} {
  func.func @_attention_kernel(%arg0: i32, %arg1: memref<2x16x32xf32, #tpu.memory_space<vmem>>, %arg2: memref<2x32xf32, #tpu.memory_space<vmem>>, %arg3: memref<32x32xf32, #tpu.memory_space<vmem>>, %arg4: memref<1x32xf32, #tpu.memory_space<vmem>>, %arg5: memref<2x32xf32, #tpu.memory_space<vmem>>, %arg6: memref<2x16xf32, #tpu.memory_space<vmem>>) attributes {dimension_semantics = [#tpu.dimension_semantics<parallel>], iteration_bounds = array<i64: 1>, scalar_prefetch = 0 : i64, scratch_operands = 0 : i64, tpu.core_type = #tpu.core_type<tc>, window_params = [{transform_indices = @transform_0, window_bounds = array<i64: 2, 16, 32>}, {transform_indices = @transform_1, window_bounds = array<i64: 2, 32>}, {pipeline_mode = #tpu.pipeline_mode<synchronous>, transform_indices = @transform_2, window_bounds = array<i64: 32, 32>}, {pipeline_mode = #tpu.pipeline_mode<synchronous>, transform_indices = @transform_3, window_bounds = array<i64: 1, 32>}, {transform_indices = @transform_4, window_bounds = array<i64: 2, 32>}, {transform_indices = @transform_5, window_bounds = array<i64: 2, 16>}]} {
    %c0 = arith.constant 0 : index
    %c0_0 = arith.constant 0 : index
    %c0_1 = arith.constant 0 : index
    %0 = vector.load %arg1[%c0, %c0_0, %c0_1] : memref<2x16x32xf32, #tpu.memory_space<vmem>>, vector<2x16x32xf32>
    %1 = vector.shape_cast %0 : vector<2x16x32xf32> to vector<32x32xf32>
    %c0_2 = arith.constant 0 : index
    %c0_3 = arith.constant 0 : index
    %2 = vector.load %arg3[%c0_2, %c0_3] : memref<32x32xf32, #tpu.memory_space<vmem>>, vector<32x32xf32>
    %cst = arith.constant dense<0.000000e+00> : vector<32x32xf32>
    %3 = tpu.matmul %1, %2, %cst {dimension_numbers = #tpu.dot_dimension_numbers<[1], [0], [0], [1], [0, 0, 1, 1], [], []>} : vector<32x32xf32>, vector<32x32xf32>, vector<32x32xf32> -> vector<32x32xf32>
    %4 = vector.shape_cast %3 : vector<32x32xf32> to vector<2x16x32xf32>
    %c0_4 = arith.constant 0 : index
    %c0_5 = arith.constant 0 : index
    %5 = vector.load %arg2[%c0_4, %c0_5] : memref<2x32xf32, #tpu.memory_space<vmem>>, vector<2x32xf32>
    %6 = vector.shape_cast %5 : vector<2x32xf32> to vector<2x1x32xf32>
    %7 = vector.broadcast %6 : vector<2x1x32xf32> to vector<2x16x32xf32>
    %8 = arith.addf %4, %7 : vector<2x16x32xf32>
    %cst_6 = arith.constant 0.000000e+00 : f32
    %9 = vector.broadcast %cst_6 : f32 to vector<2x16x32xf32>
    %10 = arith.maximumf %8, %9 : vector<2x16x32xf32>
    %c0_7 = arith.constant 0 : index
    %c0_8 = arith.constant 0 : index
    %11 = vector.load %arg4[%c0_7, %c0_8] : memref<1x32xf32, #tpu.memory_space<vmem>>, vector<1x32xf32>
    %12 = vector.shape_cast %11 : vector<1x32xf32> to vector<1x1x32xf32>
    %13 = vector.broadcast %12 : vector<1x1x32xf32> to vector<2x16x32xf32>
    %14 = arith.mulf %10, %13 : vector<2x16x32xf32>
    %cst_9 = arith.constant dense<0.000000e+00> : vector<2x16xf32>
    %15 = vector.multi_reduction <add>, %14, %cst_9 [2] : vector<2x16x32xf32> to vector<2x16xf32>
    %cst_10 = arith.constant dense<0xFF800000> : vector<2xf32>
    %16 = vector.multi_reduction <maximumf>, %15, %cst_10 [1] : vector<2x16xf32> to vector<2xf32>
    %17 = vector.shape_cast %16 : vector<2xf32> to vector<2x1xf32>
    %18 = vector.broadcast %17 : vector<2x1xf32> to vector<2x16xf32>
    %19 = arith.subf %15, %18 : vector<2x16xf32>
    %20 = math.exp %19 : vector<2x16xf32>
    %cst_11 = arith.constant dense<0.000000e+00> : vector<2xf32>
    %21 = vector.multi_reduction <add>, %20, %cst_11 [1] : vector<2x16xf32> to vector<2xf32>
    %22 = vector.shape_cast %21 : vector<2xf32> to vector<2x1xf32>
    %23 = tpu.reciprocal %22 : vector<2x1xf32> -> vector<2x1xf32>
    %24 = vector.broadcast %23 : vector<2x1xf32> to vector<2x16xf32>
    %25 = arith.mulf %20, %24 : vector<2x16xf32>
    %26 = vector.shape_cast %25 : vector<2x16xf32> to vector<2x16x1xf32>
    %27 = vector.broadcast %26 : vector<2x16x1xf32> to vector<2x16x32xf32>
    %28 = arith.mulf %0, %27 : vector<2x16x32xf32>
    %cst_12 = arith.constant dense<0.000000e+00> : vector<2x32xf32>
    %29 = vector.multi_reduction <add>, %28, %cst_12 [1] : vector<2x16x32xf32> to vector<2x32xf32>
    %c0_13 = arith.constant 0 : index
    %c0_14 = arith.constant 0 : index
    %30 = vector.load %arg5[%c0_13, %c0_14] : memref<2x32xf32, #tpu.memory_space<vmem>>, vector<2x32xf32>
    tpu.vector_store %arg5[%c0_13, %c0_14], %29 {strides = array<i32>} : memref<2x32xf32, #tpu.memory_space<vmem>>, vector<2x32xf32>,
    %c0_15 = arith.constant 0 : index
    %c0_16 = arith.constant 0 : index
    %31 = vector.load %arg6[%c0_15, %c0_16] : memref<2x16xf32, #tpu.memory_space<vmem>>, vector<2x16xf32>
    tpu.vector_store %arg6[%c0_15, %c0_16], %25 {strides = array<i32>} : memref<2x16xf32, #tpu.memory_space<vmem>>, vector<2x16xf32>,
    return
  }
  func.func @transform_0(%arg0: i32) -> (i32, i32, i32) {
    %c0_i32 = arith.constant 0 : i32
    %c0_i32_0 = arith.constant 0 : i32
    %c0_i32_1 = arith.constant 0 : i32
    return %arg0, %c0_i32, %c0_i32_0 : i32, i32, i32
  }
  func.func @transform_1(%arg0: i32) -> (i32, i32) {
    %c0_i32 = arith.constant 0 : i32
    %c0_i32_0 = arith.constant 0 : i32
    return %arg0, %c0_i32 : i32, i32
  }
  func.func @transform_2(%arg0: i32) -> (i32, i32) {
    %c0_i32 = arith.constant 0 : i32
    %c0_i32_0 = arith.constant 0 : i32
    %c0_i32_1 = arith.constant 0 : i32
    return %c0_i32, %c0_i32_0 : i32, i32
  }
  func.func @transform_3(%arg0: i32) -> (i32, i32) {
    %c0_i32 = arith.constant 0 : i32
    %c0_i32_0 = arith.constant 0 : i32
    %c0_i32_1 = arith.constant 0 : i32
    return %c0_i32, %c0_i32_0 : i32, i32
  }
  func.func @transform_4(%arg0: i32) -> (i32, i32) {
    %c0_i32 = arith.constant 0 : i32
    %c0_i32_0 = arith.constant 0 : i32
    return %arg0, %c0_i32 : i32, i32
  }
  func.func @transform_5(%arg0: i32) -> (i32, i32) {
    %c0_i32 = arith.constant 0 : i32
    %c0_i32_0 = arith.constant 0 : i32
    return %arg0, %c0_i32 : i32, i32
  }
}

</mosaic_0001>

<bundles_post_ra>
// kernel: tpu_custom_call.1
= control target key start
LH: loop header
LB: loop body
LE: loop exit
PB: predicated region body
PF: predicated region fallthrough
CT: control target
= control target key end

     0   :  { %11 = vsyncpa [#allocation3], 0  ;;  %s748_s0 = inlined_call_operand.hbm [shape: f32[2,16,32], index: 0, kind: input, shape index: {}]   ;;  %s749_s1 = inlined_call_operand.vmem [shape: f32[2,32], index: 1, kind: input, shape index: {}]   ;;  %s750_s2 = inlined_call_operand.hbm [shape: f32[32,32], index: 2, kind: input, shape index: {}]   ;;  %s751_s3 = inlined_call_operand.vmem [shape: f32[1,32], index: 3, kind: input, shape index: {}]   ;;  %s752_s4 = inlined_call_operand.hbm [shape: f32[2,32], index: 4, kind: output, shape index: {0}]   ;;  %s753_s5 = inlined_call_operand.hbm [shape: f32[2,16], index: 5, kind: output, shape index: {1}]  }
   0x1   :  { %12 = vsyncpa [#allocation6], 0 }
   0x2   :  { %13 = vsyncpa [#allocation4], 0 }
   0x3   :  { %14 = vsyncpa [#allocation9], 0  ;;  %s586_s18 = smov [#allocation2]   ;;  %s490_s22 = scalar_lea.hbm %s748_s0, 512 }
   0x4   :  { %s20_s19 = sshll.u32 %s586_s18, 4  ;;  %p491_p0 = scmp.ne.s32.totalorder %s748_s0, %s490_s22  ;;  %s21_s19 = int_to_ptr.vmem [resolvable:$true] %s20_s19 }
   0x5   :  { %p494_p1 = scmp.lt.u32.totalorder %s490_s22, %s748_s0 }
   0x7   :  { %p496_p2 = pnand %p494_p1, %p491_p0 }
   0x9   :  { %499 = shalt.err (!%p496_p2)
}
   0xa   :  { %s500_s27 = scalar_lea.vmem %s21_s19, 512  ;;  %p505_p4 = scmp.lt.s32.totalorder %s21_s19, %s21_s19 }
   0xb   :  { %p501_p3 = scmp.ne.s32.totalorder %s21_s19, %s500_s27  ;;  %p506_p5 = scmp.lt.s32.totalorder %s500_s27, %s500_s27 }
   0xd   :  { %p507_p6 = por %p506_p5, %p505_p4 }
   0xf   :  { %p508_p7 = pnand %p507_p6, %p501_p3 }
  0x11   :  { %511 = shalt.err (!%p508_p7)
}
  0x12   :  { %s587_s28 = smov 128   ;;  %s588_s29 = smov 8  }
  0x13   :  { %26 = dma.hbm_to_vmem [thread:$0]  %s748_s0, 512, %s21_s19, [#allocation3], %s587_s28, %s587_s28, %s588_s29  }
  0x14   :  { %s589_s7 = smov [#allocation5]   ;;  %s512_s11 = scalar_lea.hbm %s750_s2, 512 }
  0x15   :  { %s34_s8 = sshll.u32 %s589_s7, 4  ;;  %p513_p8 = scmp.ne.s32.totalorder %s750_s2, %s512_s11  ;;  %s35_s8 = int_to_ptr.vmem [resolvable:$true] %s34_s8 }
  0x16   :  { %p516_p9 = scmp.lt.u32.totalorder %s512_s11, %s750_s2 }
  0x18   :  { %p518_p10 = pnand %p516_p9, %p513_p8 }
  0x1a   :  { %521 = shalt.err (!%p518_p10)
}
  0x1b   :  { %s522_s16 = scalar_lea.vmem %s35_s8, 512  ;;  %p527_p12 = scmp.lt.s32.totalorder %s35_s8, %s35_s8 }
  0x1c   :  { %p523_p11 = scmp.ne.s32.totalorder %s35_s8, %s522_s16  ;;  %p528_p13 = scmp.lt.s32.totalorder %s522_s16, %s522_s16 }
  0x1e   :  { %p529_p0 = por %p528_p13, %p527_p12 }
  0x20   :  { %p530_p1 = pnand %p529_p0, %p523_p11 }
  0x22   :  { %533 = shalt.err (!%p530_p1)
}
  0x23   :  { %40 = dma.hbm_to_vmem [thread:$0]  %s750_s2, 512, %s35_s8, [#allocation6], %s587_s28, %s587_s28, %s588_s29  }
  0x24   :  { %578 = dma.done.wait [#allocation3], 512  }
  0x25   :  { %579 = vsyncadd [#allocation3], 4294966784 }
  0x26   :  { %580 = dma.done.wait [#allocation6], 512  }
  0x27   :  { %581 = vsyncadd [#allocation6], 4294966784  ;;  %vm57_vm0 = vcmask 261120   ;;  %v53_v0 = vld [vmem:[#allocation5] sm:$0xff]  ;;  %v54_v1 = vld [vmem:[#allocation5 + $0x8] sm:$0xff]  ;;  %v168_v12 = vlaneseq  ;;  %vm235_vm1 = vcmask 130112  }
  0x28   :  { %v55_v2 = vld [vmem:[#allocation5 + $0x10] sm:$0xff]  ;;  %v458_v3 = vpack.c.bf16 %v54_v1, %v53_v0  ;;  %v56_v4 = vld [vmem:[#allocation5 + $0x18] sm:$0xff]  ;;  %v648_v5 = vld [vmem:[#allocation2] sm:$0xff]  ;;  %v590_v10 = vmov 1966171168   ;;  %vm246_vm2 = vcmask 1041409  }
  0x29   :  { %v650_v6 = vld [vmem:[#allocation2 + $0x10] sm:$0xff]  ;;  %v462_v7 = vpack.c.bf16 %v56_v4, %v55_v2  ;;  %452 = vmatprep.mubr.msk.f32.mxu0 %vm57_vm0, %v648_v5  ;;  %v656_v8 = vld [vmem:[#allocation2 + $0x8] sm:$0xff]  ;;  %v658_v9 = vld [vmem:[#allocation2 + $0x18] sm:$0xff]  ;;  %v166_v11 = vunpack.c.l.s4 %v590_v10  ;;  %v664_v14 = vshrl.u32 %v168_v12, 7  ;;  %v225_v44 = vand.u32 127, %v168_v12 }
  0x2a   :  { %455 = vmatprep.mubr.msk.f32.mxu1 %vm57_vm0, %v650_v6  ;;  %459 = vmatprep.subr.bf16.mxu0 %v458_v3  ;;  %v434_v15 = vld.sshfl [vmem:[%s749_s1] sm:$0x11 pattern:$0x75316420]  ;;  %vm249_vm3 = vcmask 123904   ;;  %v591_v60 = vmov 0  }
  0x2b   :  { %466 = vmatprep.subr.bf16.mxu1 %v458_v3  ;;  %461 = vmatpush3.bf16.msra.mxu0 %v458_v3  ;;  %v167_v13 = vunpack.c.0.s8 %v166_v11  ;;  %v164_v17 = vcombine.high %v434_v15, %v434_v15  ;;  %v671_v19 = vsub.s32 0, %v664_v14  ;;  %v435_v31 = vld [vmem:[%s751_s3] ss:$0 sm:$0xff]  ;;  %v230_v45 = vadd.s32 4294967288, %v225_v44  ;;  %s592_s3 = smov [#allocation8]  }
  0x2c   :  { %468 = vmatpush3.bf16.msra.mxu1 %v458_v3  ;;  %463 = vmatprep.subr.bf16.mxu0 %v462_v7  ;;  %v683_v48 = vsub.s32 %v225_v44, %v664_v14  ;;  %v260_v61 = vsub.s32 1, %v664_v14  ;;  %s416_s20 = sshll.u32 %s592_s3, 4  ;;  %s417_s20 = int_to_ptr.vmem [resolvable:$true] %s416_s20 }
  0x2d   :  { %467 = vmatprep.subr.bf16.mxu1 %v462_v7  ;;  %v170_v16 = vsub.s32 %v167_v13, %v664_v14  ;;  %v686_v49 = vsub.s32 %v230_v45, %v664_v14  ;;  %479 = vset.pattern.permute.xlu0 %v591_v60  ;;  %s534_s21 = scalar_lea.vmem %s417_s20, 32  ;;  %p539_p3 = scmp.lt.s32.totalorder %s417_s20, %s417_s20 }
  0x2e   :  { %478 = vset.pattern.permute.xlu1 %v591_v60  ;;  %p535_p2 = scmp.ne.s32.totalorder %s417_s20, %s534_s21  ;;  %p540_p4 = scmp.lt.s32.totalorder %s534_s21, %s534_s21 }
  0x2f   :  { %465 = vmatpush3.bf16.msra.mxu0 %v462_v7  ;;  %v171_v18 = vrot.slane %v434_v15, %v170_v16  ;;  %v178_v20 = vrot.slane %v164_v17, %v170_v16 }
  0x30   :  { %469 = vmatpush3.bf16.msra.mxu1 %v462_v7  ;;  %p541_p5 = por %p540_p4, %p539_p3 }
  0x31   :  { %v182_v21 = vrot.slane %v171_v18, %v671_v19  ;;  %v186_v22 = vrot.slane %v178_v20, %v671_v19 }
  0x32   :  { %453 = vmatmul.mubr.msk.f32.vlgmr.msra.gmra.mrb[0].mxu0 %vm57_vm0, %v656_v8  ;;  %p542_p6 = pnand %p541_p5, %p535_p2 }
  0x33   :  { %456 = vmatmul.mubr.msk.f32.vlgmr.msra.gmra.mrb[0].mxu1 %vm57_vm0, %v658_v9 }
 0x105   :  { %v454_v23 = vpop.f32.mrb[0].mxu0 }
 0x106   :  { %v457_v24 = vpop.f32.mrb[0].mxu1  ;;  %v190_v25 = vadd.f32 %v454_v23, %v182_v21  ;;  %v136_v27 = vpop.f32.mrb[1].mxu0 }
 0x107   :  { %v192_v26 = vadd.f32 %v457_v24, %v186_v22  ;;  %v146_v28 = vpop.f32.mrb[1].mxu1  ;;  %v189_v29 = vadd.f32 %v182_v21, %v136_v27 }
 0x108   :  { %v191_v30 = vadd.f32 %v186_v22, %v146_v28  ;;  %v194_v32 = vmax.f32 %v190_v25, 0.0 }
 0x109   :  { %v196_v33 = vmax.f32 %v192_v26, 0.0  ;;  %v193_v34 = vmax.f32 %v189_v29, 0.0 }
 0x10a   :  { %v195_v35 = vmax.f32 %v191_v30, 0.0  ;;  %v205_v41 = vmul.f32 %v435_v31, %v194_v32 }
 0x10b   :  { %v204_v37 = vmul.f32 %v435_v31, %v193_v34  ;;  %v207_v40 = vmul.f32 %v435_v31, %v196_v33 }
 0x10c   :  { %v206_v36 = vmul.f32 %v435_v31, %v195_v35  ;;  %v211_v43 = vsel %vm57_vm0, %v205_v41, 0.0 }
 0x10d   :  { %v208_v39 = vsel %vm57_vm0, %v204_v37, 0.0  ;;  %v217_v42 = vsel %vm57_vm0, %v207_v40, 0.0 }
 0x10e   :  { %v214_v38 = vsel %vm57_vm0, %v206_v36, 0.0  ;;  %209 = vadd.xlane.f32.xlu0 %v208_v39 }
 0x10f   :  { %215 = vadd.xlane.f32.xlu1 %v214_v38 }
 0x112   :  { %212 = vadd.xlane.f32.xlu0 %v211_v43 }
 0x113   :  { %218 = vadd.xlane.f32.xlu1 %v217_v42 }
 0x19b   :  { %v210_v47 = vpop.xlane.xlu0 %209 }
 0x19c   :  { %v216_v46 = vpop.xlane.xlu1 %215  ;;  %v229_v53 = vrot.slane %v210_v47, %v683_v48 }
 0x19d   :  { %v240_v52 = vrot.slane %v216_v46, %v683_v48 }
 0x19f   :  { %v213_v51 = vpop.xlane.xlu0 %212 }
 0x1a0   :  { %v219_v50 = vpop.xlane.xlu1 %218  ;;  %v234_v55 = vrot.slane %v213_v51, %v686_v49 }
 0x1a1   :  { %v244_v54 = vrot.slane %v219_v50, %v686_v49 }
 0x1a2   :  { %v236_v56 = vsel %vm235_vm1, %v234_v55, %v229_v53 }
 0x1a3   :  { %v245_v57 = vsel %vm235_vm1, %v244_v54, %v240_v52 }
 0x1a4   :  { %v247_v58 = vsel %vm246_vm2, %v245_v57, %v236_v56 }
 0x1a5   :  { %v250_v59 = vsel %vm249_vm3, %v247_v58, -inf }
 0x1a6   :  { %251 = vmax.xlane.f32.xlu0 %v250_v59 }
 0x233   :  { %v252_v62 = vpop.xlane.xlu0 %251 }
 0x234   :  { %v257_v63 = vrot.slane %v252_v62, %v671_v19  ;;  %v261_v0 = vrot.slane %v252_v62, %v260_v61 }
 0x236   :  { %v264_v1 = vsub.f32 %v210_v47, %v257_v63  ;;  %v265_v2 = vsub.f32 %v213_v51, %v257_v63  ;;  %v266_v3 = vsub.f32 %v216_v46, %v261_v0  ;;  %v267_v10 = vsub.f32 %v219_v50, %v261_v0 }
 0x238   :  { %v268_v4 = vmul.f32 1.442695, %v264_v1  ;;  %v270_v7 = vmul.f32 1.442695, %v265_v2  ;;  %v272_v11 = vmul.f32 1.442695, %v266_v3 }
 0x239   :  { %v274_v12 = vmul.f32 1.442695, %v267_v10 }
 0x23a   :  { %480 = vpow2.f32 %v268_v4 }
 0x23b   :  { %482 = vpow2.f32 %v270_v7 }
 0x23c   :  { %484 = vpow2.f32 %v272_v11 }
 0x23d   :  { %486 = vpow2.f32 %v274_v12 }
 0x244   :  { %v481_v13 = vpop.eup %480 }
 0x245   :  { %v483_v15 = vpop.eup %482  ;;  %281 = vperm.xlu1 %478, %v481_v13  }
 0x246   :  { %284 = vperm.xlu0 %479, %v483_v15   ;;  %v485_v14 = vpop.eup %484 }
 0x247   :  { %v487_v16 = vpop.eup %486 }
 0x249   :  { %287 = vperm.xlu1 %478, %v485_v14  }
 0x24d   :  { %290 = vperm.xlu1 %478, %v487_v16  }
 0x2c4   :  { %v282_v17 = vpop.permute.xlu1 %281 }
 0x2c5   :  { %v285_v18 = vpop.permute.xlu0 %284  ;;  %v295_v22 = vrot.slane %v282_v17, %v683_v48 }
 0x2c6   :  { %v299_v21 = vrot.slane %v285_v18, %v686_v49 }
 0x2c8   :  { %v288_v20 = vpop.permute.xlu1 %287  ;;  %v300_v26 = vsel %vm235_vm1, %v299_v21, %v295_v22 }
 0x2c9   :  { %v304_v24 = vrot.slane %v288_v20, %v683_v48 }
 0x2cc   :  { %v291_v23 = vpop.permute.xlu1 %290 }
 0x2cd   :  { %v308_v25 = vrot.slane %v291_v23, %v686_v49 }
 0x2cf   :  { %v309_v27 = vsel %vm235_vm1, %v308_v25, %v304_v24 }
 0x2d0   :  { %v310_v28 = vsel %vm246_vm2, %v309_v27, %v300_v26 }
 0x2d1   :  { %v312_v29 = vsel %vm249_vm3, %v310_v28, 0.0 }
 0x2d2   :  { %313 = vadd.xlane.f32.xlu1 %v312_v29 }
 0x35f   :  { %v314_v30 = vpop.xlane.xlu1 %313 }
 0x360   :  { %488 = vrcp.f32 %v314_v30 }
 0x36a   :  { %v489_v31 = vpop.eup %488 }
 0x36b   :  { %v320_v32 = vrot.slane %v489_v31, %v671_v19  ;;  %v324_v35 = vrot.slane %v489_v31, %v260_v61 }
 0x36d   :  { %v327_v33 = vmul.f32 %v481_v13, %v320_v32  ;;  %v328_v34 = vmul.f32 %v483_v15, %v320_v32  ;;  %v329_v36 = vmul.f32 %v485_v14, %v324_v35  ;;  %v330_v37 = vmul.f32 %v487_v16, %v324_v35 }
 0x36f   :  { %333 = vperm.xlu0 %479, %v327_v33  }
 0x373   :  { %338 = vperm.xlu0 %479, %v328_v34  }
 0x377   :  { %343 = vperm.xlu0 %479, %v329_v36  }
 0x37b   :  { %348 = vperm.xlu0 %479, %v330_v37  }
 0x3ee   :  { %v334_v38 = vpop.permute.xlu0 %333 }
 0x3ef   :  { %v351_v39 = vmul.f32 %v334_v38, %v648_v5  ;;  %v382_v5 = vrot.slane %v334_v38, %v683_v48 }
 0x3f1   :  { %v355_v42 = vsel %vm57_vm0, %v351_v39, 0.0 }
 0x3f2   :  { %v339_v40 = vpop.permute.xlu0 %338 }
 0x3f3   :  { %v352_v41 = vmul.f32 %v339_v40, %v656_v8  ;;  %v386_v46 = vrot.slane %v339_v40, %v686_v49 }
 0x3f5   :  { %v356_v43 = vsel %vm57_vm0, %v352_v41, 0.0 }
 0x3f6   :  { %v357_v19 = vadd.f32 %v356_v43, %v355_v42  ;;  %v344_v44 = vpop.permute.xlu0 %343 }
 0x3f7   :  { %v353_v47 = vmul.f32 %v344_v44, %v650_v6  ;;  %v391_v52 = vrot.slane %v344_v44, %v683_v48  ;;  %v387_v6 = vsel %vm235_vm1, %v386_v46, %v382_v5 }
 0x3f8   :  { %v358_v45 = vrot.slane %v357_v19, 4 }
 0x3f9   :  { %v364_v54 = vsel %vm57_vm0, %v353_v47, 0.0 }
 0x3fa   :  { %v359_v50 = vadd.f32 %v358_v45, %v357_v19  ;;  %v349_v51 = vpop.permute.xlu0 %348 }
 0x3fb   :  { %v354_v8 = vmul.f32 %v349_v51, %v658_v9  ;;  %v395_v53 = vrot.slane %v349_v51, %v686_v49 }
 0x3fc   :  { %v360_v57 = vrot.slane %v359_v50, 2 }
 0x3fd   :  { %v365_v55 = vsel %vm57_vm0, %v354_v8, 0.0  ;;  %v396_v56 = vsel %vm235_vm1, %v395_v53, %v391_v52 }
 0x3fe   :  { %v366_v58 = vadd.f32 %v365_v55, %v364_v54  ;;  %v397_v59 = vsel %vm246_vm2, %v396_v56, %v387_v6 }
 0x3ff   :  { %399 = vst.msk [vmem:[#allocation8] sm:$0x3] %vm249_vm3, %v397_v59 }
 0x400   :  { %v367_v48 = vrot.slane %v366_v58, 4 }
 0x401   :  { %545 = shalt.err (!%p542_p6)
}
 0x402   :  { %s546_s24 = scalar_lea.hbm %s753_s5, 32 }
 0x403   :  { %p547_p7 = scmp.ne.s32.totalorder %s753_s5, %s546_s24  ;;  %p550_p8 = scmp.lt.u32.totalorder %s546_s24, %s753_s5 }
 0x405   :  { %p552_p9 = pnand %p550_p8, %p547_p7 }
 0x407   :  { %555 = shalt.err (!%p552_p9)
}
 0x408   :  { %419 = dma.vmem_to_hbm [thread:$0]  %s417_s20, 32, %s753_s5, [#allocation9]   ;;  %v361_v9 = vadd.f32 %v360_v57, %v359_v50  ;;  %v368_v49 = vadd.f32 %v367_v48, %v366_v58  ;;  %vm377_vm4 = vcmask 254976  }
 0x409   :  { %s593_s6 = smov [#allocation7]  }
 0x40a   :  { %v369_v60 = vrot.slane %v368_v49, 2  ;;  %v362_v62 = vrot.slane %v361_v9, 1  ;;  %s406_s7 = sshll.u32 %s593_s6, 4  ;;  %s407_s7 = int_to_ptr.vmem [resolvable:$true] %s406_s7 }
 0x40b   :  { %s556_s8 = scalar_lea.vmem %s407_s7, 32  ;;  %p561_p11 = scmp.lt.s32.totalorder %s407_s7, %s407_s7 }
 0x40c   :  { %v370_v61 = vadd.f32 %v369_v60, %v368_v49  ;;  %v363_v0 = vadd.f32 %v362_v62, %v361_v9  ;;  %p557_p10 = scmp.ne.s32.totalorder %s407_s7, %s556_s8  ;;  %p562_p12 = scmp.lt.s32.totalorder %s556_s8, %s556_s8 }
 0x40e   :  { %v371_v63 = vrot.slane %v370_v61, 1  ;;  %p563_p13 = por %p562_p12, %p561_p11 }
 0x410   :  { %v372_v1 = vadd.f32 %v371_v63, %v370_v61  ;;  %p564_p0 = pnand %p563_p13, %p557_p10 }
 0x412   :  { %v375_v2 = vsel %vm246_vm2, %v372_v1, %v363_v0 }
 0x413   :  { %378 = vst.msk [vmem:[#allocation7] sm:$0x3] %vm377_vm4, %v375_v2 }
 0x414   :  { %567 = shalt.err (!%p564_p0)
}
 0x415   :  { %s568_s10 = scalar_lea.hbm %s752_s4, 32 }
 0x416   :  { %p569_p1 = scmp.ne.s32.totalorder %s752_s4, %s568_s10  ;;  %p572_p2 = scmp.lt.u32.totalorder %s568_s10, %s752_s4 }
 0x418   :  { %p574_p3 = pnand %p572_p2, %p569_p1 }
 0x41a   :  { %577 = shalt.err (!%p574_p3)
}
 0x41b   :  { %409 = dma.vmem_to_hbm [thread:$0]  %s407_s7, 32, %s752_s4, [#allocation4]  }
 0x41c   :  { %582 = dma.done.wait [#allocation4], 32  }
 0x41d   :  { %583 = vsyncadd [#allocation4], 4294967264 }
 0x41e   :  { %584 = dma.done.wait [#allocation9], 32  }
 0x41f   :  { %585 = vsyncadd [#allocation9], 4294967264 }
 0x420   :  { %426 = vsyncpa [#allocation3], 1 }
 0x421   :  { %427 = vsyncpa [#allocation6], 1 }
 0x422   :  { %428 = vsyncpa [#allocation4], 1 }
 0x423   :  { %429 = vsyncpa [#allocation9], 1 }

</bundles_post_ra>
